<compile_context>
chip_gen: v7x
topology: tpu7x:2x2x1
jax: 0.10.0
libtpu: 0.0.40
codegen_flags: <defaults>
</compile_context>

<pallas_src>
import functools

import jax
import jax.numpy as jnp
from jax.experimental import pallas as pl
from jax.experimental.pallas import tpu as pltpu


# Resolved lazily on the first fused call: whether pipeline_mode=pl.Buffered(1)
# is accepted for the VMEM-resident weight/bias BlockSpecs.
_WEIGHT_SINGLE_BUFFER_OK = None


def _round_up(x, m):
    return ((x + m - 1) // m) * m


def _choose_divisor(n, candidates):
    for c in candidates:
        if n % c == 0:
            return c
    return n


def _activation_fn(name):
    if name == "relu":
        return lambda h: jnp.maximum(h, 0.0)
    if name == "tanh":
        return jnp.tanh
    if name == "sigmoid":
        return jax.nn.sigmoid
    raise ValueError(f"Activation function {name} not supported")


def _choose_tile_b(B, tile_b):
    tile_b = max(16, _round_up(int(tile_b), 16))
    if B > tile_b:
        return tile_b
    if B >= 256:
        # Split into at least two grid steps so the "parallel" batch axis can be
        # sharded across both TensorCores on v7x (harmless on v5e/v6e's 1 TC).
        return _round_up(pl.cdiv(B, 2), 16)
    return B  # single block == full array dim (always a legal block shape)


def _vmem_capacity_bytes():
    try:
        cap = int(getattr(pltpu.get_tpu_info(), "vmem_capacity_bytes", 0))
        if cap > 0:
            return cap
    except Exception:
        pass
    return 128 * 1024 * 1024  # v5e/v6e default; v7x reports 64 MiB via the query


# ----------------------------------------------------------------------------
# Kernels
# ----------------------------------------------------------------------------
def _mlp_fused_kernel(*refs, num_linear, activation, has_bias):
    # refs = (x_tile, [w0, (b0)], [w1, (b1)], ..., out_tile)
    x_ref = refs[0]
    out_ref = refs[-1]
    act = _activation_fn(activation)

    h = x_ref[...]  # bf16 tile, fed to the MXU directly (no f32 upcast)
    idx = 1
    for layer in range(num_linear):
        w_ref = refs[idx]
        idx += 1
        # bf16 x bf16 -> f32 accumulation on the MXU.
        y = jnp.dot(h, w_ref[...], preferred_element_type=jnp.float32)
        if has_bias:
            b_ref = refs[idx]
            idx += 1
            y = y + b_ref[...]
        if layer < num_linear - 1:
            # Activation math in f32 (exact on v5e too); result stored bf16 for
            # the next MXU feed (identical to casting at the next dot).
            h = act(y).astype(jnp.bfloat16)
            # Dropout(p=0.0) is the identity (and nn.Dropout is identity in eval).
            # TODO(synk): stochastic dropout for p > 0 via pltpu.prng_seed / prng_random_bits.
        else:
            h = y
    out_ref[...] = h.astype(out_ref.dtype)


def _linear_kernel(*refs, nk, has_bias, activation, apply_act):
    # refs = (x, w, [b], out, acc_scratch); grid = (batch tiles, N tiles, K tiles)
    x_ref, w_ref = refs[0], refs[1]
    b_ref = refs[2] if has_bias else None
    o_ref, acc_ref = refs[-2], refs[-1]

    @pl.when(pl.program_id(2) == 0)
    def _():
        acc_ref[...] = jnp.zeros_like(acc_ref)

    acc_ref[...] += jnp.dot(x_ref[...], w_ref[...],
                            preferred_element_type=jnp.float32)

    @pl.when(pl.program_id(2) == nk - 1)
    def _():
        y = acc_ref[...]
        if has_bias:
            y = y + b_ref[...]
        if apply_act:
            y = _activation_fn(activation)(y)
        o_ref[...] = y.astype(o_ref.dtype)


# ----------------------------------------------------------------------------
# Parameter construction / preprocessing
# ----------------------------------------------------------------------------
def init_mlp_params(key, num_inputs, num_outputs, sequence_length,
                    hidden_layers, hidden_size, bias=True):
    """Mirror MLP._initialize_weights: weights ~ U(-0.01, 0.01), biases = 0.

    Weights are stored as (in_features, out_features) == transpose of nn.Linear,
    so each layer is y = x @ W + b.
    """
    in_dim = num_inputs * sequence_length
    dims = [in_dim] + [hidden_size] * hidden_layers + [num_outputs]
    params = []
    for i in range(len(dims) - 1):
        key, sub = jax.random.split(key)
        w = jax.random.uniform(sub, (dims[i], dims[i + 1]),
                               dtype=jnp.float32, minval=-0.01, maxval=0.01)
        b = jnp.zeros((dims[i + 1],), dtype=jnp.float32) if bias else None
        params.append((w, b))
    return params


def prepare_params(params):
    """One-time preprocessing:
      * weights cast to bf16; output dims zero-padded to a multiple of 128
        (lane-dense, unmasked stores, full MXU columns); input dims zero-padded
        to the previous layer's padded width (zero rows make the padding exact,
        even for sigmoid whose padded activation columns are 0.5);
      * the FIRST layer's input dim stays unpadded so x needs no padded copy;
      * biases kept f32 as (1, out_pad) rows."""
    prepared = []
    prev_pad = None
    for idx, (w, b) in enumerate(params):
        din, dout = int(w.shape[0]), int(w.shape[1])
        din_p = din if idx == 0 else prev_pad
        assert din <= din_p
        dout_p = _round_up(dout, 128)
        wp = jnp.zeros((din_p, dout_p), jnp.bfloat16)
        wp = wp.at[:din, :dout].set(w.astype(jnp.bfloat16))
        bp = None
        if b is not None:
            bp = jnp.zeros((1, dout_p), jnp.float32)
            bp = bp.at[0, :dout].set(b.astype(jnp.float32))
        prepared.append((wp, bp))
        prev_pad = dout_p
    return prepared


# ----------------------------------------------------------------------------
# Layer-wise fallback path (resident weights too large for VMEM, e.g. v7x 64 MiB)
# ----------------------------------------------------------------------------
def _linear_layer(h, w, b, *, activation, apply_act, tile_b):
    B, K = int(h.shape[0]), int(h.shape[1])
    Kw, N = int(w.shape[0]), int(w.shape[1])
    assert K == Kw, (K, Kw)
    TILE_B = _choose_tile_b(B, tile_b)
    TILE_K = _choose_divisor(K, (512, 256, 128))   # divides K exactly (or == K)
    TILE_N = _choose_divisor(N, (512, 256, 128))   # N is a multiple of 128
    nb, nn, nk = pl.cdiv(B, TILE_B), N // TILE_N, K // TILE_K
    has_bias = b is not None

    inputs = [h, w]
    in_specs = [pl.BlockSpec((TILE_B, TILE_K), lambda i, j, k: (i, k)),
                pl.BlockSpec((TILE_K, TILE_N), lambda i, j, k: (k, j))]
    if has_bias:
        inputs.append(b)
        in_specs.append(pl.BlockSpec((1, TILE_N), lambda i, j, k: (0, j)))

    transcend = B * N if (apply_act and activation in ("tanh", "sigmoid")) else 0
    cost = pl.CostEstimate(
        flops=2 * B * K * N,
        transcendentals=transcend,
        bytes_accessed=B * K * 2 + K * N * 2 + (N * 4 if has_bias else 0) + B * N * 2)

    kernel = functools.partial(_linear_kernel, nk=nk, has_bias=has_bias,
                               activation=activation, apply_act=apply_act)
    return pl.pallas_call(
        kernel,
        out_shape=jax.ShapeDtypeStruct((B, N), jnp.bfloat16),
        grid=(nb, nn, nk),
        in_specs=in_specs,
        out_specs=pl.BlockSpec((TILE_B, TILE_N), lambda i, j, k: (i, j)),
        scratch_shapes=[pltpu.VMEM((TILE_B, TILE_N), jnp.float32)],
        compiler_params=pltpu.CompilerParams(
            dimension_semantics=("parallel", "parallel", "arbitrary")),
        cost_estimate=cost,
    )(*inputs)


# ----------------------------------------------------------------------------
# Forward pass
# ----------------------------------------------------------------------------
def mlp_forward(x, prepared_params, num_outputs, activation="relu",
                tile_b=512, force_layerwise=False):
    """x: (batch, sequence_length, num_inputs) or already-flat (batch, features)."""
    _activation_fn(activation)  # validate the name early
    num_linear = len(prepared_params)
    assert num_linear >= 1
    has_bias = prepared_params[0][1] is not None
    for (_w, _b) in prepared_params:
        assert (_b is not None) == has_bias, \
            "prepared_params must consistently contain (or omit) biases"

    B = int(x.shape[0])
    x_flat = x.reshape(B, -1)                        # == torch x.view(B, -1)
    in_dim = int(x_flat.shape[1])
    assert in_dim == int(prepared_params[0][0].shape[0]), \
        "input feature size does not match first layer weight"
    x_bf16 = x_flat.astype(jnp.bfloat16)             # halve x HBM bytes; MXU feed

    out_pad = int(prepared_params[-1][0].shape[1])
    TILE_B = _choose_tile_b(B, tile_b)
    num_tiles = pl.cdiv(B, TILE_B)

    # VMEM budget: resident weights/biases + streamed x/out tiles + intermediates.
    resident_bytes = 0
    for (w, b) in prepared_params:
        resident_bytes += w.size * w.dtype.itemsize
        if b is not None:
            resident_bytes += b.size * b.dtype.itemsize
    max_width = max([in_dim] + [int(w.shape[1]) for (w, _b) in prepared_params])
    tile_bytes = (2 * TILE_B * (in_dim + out_pad) * 2   # double-buffered bf16 x/out tiles
                  + 4 * TILE_B * max_width * 4)          # f32 intermediates headroom
    vmem_cap = _vmem_capacity_bytes()
    needed = 2 * resident_bytes + tile_bytes + (2 << 20)
    vmem_limit = min(int(vmem_cap * 0.9), max(32 << 20, int(needed)))
    use_fused = (not force_layerwise) and (needed <= vmem_cap // 3)

    if not use_fused:
        # Resident weights would not comfortably fit in VMEM (matters on v7x's
        # 64 MiB): run one K/N-tiled matmul+bias+activation kernel per layer.
        h = x_bf16
        for li, (w, b) in enumerate(prepared_params):
            h = _linear_layer(h, w, b, activation=activation,
                              apply_act=(li < num_linear - 1), tile_b=tile_b)
        return h[:, :num_outputs].astype(jnp.float32)

    flops = 2 * B * sum(int(w.shape[0]) * int(w.shape[1])
                        for (w, _b) in prepared_params)
    transcend = (B * sum(int(w.shape[1]) for (w, _b) in prepared_params[:-1])
                 if activation in ("tanh", "sigmoid") else 0)
    cost = pl.CostEstimate(
        flops=flops, transcendentals=transcend,
        bytes_accessed=int(x_bf16.size) * 2 + resident_bytes + B * out_pad * 2)

    kernel = functools.partial(_mlp_fused_kernel, num_linear=num_linear,
                               activation=activation, has_bias=has_bias)
    flat_inputs = [x_bf16]
    for (w, b) in prepared_params:
        flat_inputs.append(w)
        if has_bias:
            flat_inputs.append(b)

    def _fused_call(single_buffer_weights):
        # Constant-index_map weights/biases stay VMEM-resident across grid steps;
        # single-buffer them when supported (halves resident footprint on v7x).
        wkw = ({"pipeline_mode": pl.Buffered(1)} if single_buffer_weights else {})
        in_specs = [pl.BlockSpec((TILE_B, in_dim), lambda i: (i, 0))]
        for (w, b) in prepared_params:
            in_specs.append(pl.BlockSpec(tuple(w.shape), lambda i: (0, 0), **wkw))
            if has_bias:
                in_specs.append(pl.BlockSpec(tuple(b.shape), lambda i: (0, 0), **wkw))
        return pl.pallas_call(
            kernel,
            out_shape=jax.ShapeDtypeStruct((B, out_pad), jnp.bfloat16),
            grid=(num_tiles,),
            in_specs=in_specs,
            out_specs=pl.BlockSpec((TILE_B, out_pad), lambda i: (i, 0)),
            compiler_params=pltpu.CompilerParams(
                dimension_semantics=("parallel",),
                vmem_limit_bytes=vmem_limit),
            cost_estimate=cost,
        )(*flat_inputs)

    global _WEIGHT_SINGLE_BUFFER_OK
    if _WEIGHT_SINGLE_BUFFER_OK is None:
        try:
            out_padded = _fused_call(True)
            jax.block_until_ready(out_padded)
            _WEIGHT_SINGLE_BUFFER_OK = True
        except Exception:
            _WEIGHT_SINGLE_BUFFER_OK = False
            out_padded = _fused_call(False)
    else:
        out_padded = _fused_call(_WEIGHT_SINGLE_BUFFER_OK)

    return out_padded[:, :num_outputs].astype(jnp.float32)


def mlp_reference(x, params, activation="relu"):
    """Pure-JAX reference mirroring the kernel's numerics contract exactly
    (bf16 dot operands, f32 accumulation, bf16 inter-layer activations, bf16
    output). Zero-padding inside the kernel is numerically exact, so this
    matches the Pallas output."""
    act = _activation_fn(activation)
    h = x.reshape(x.shape[0], -1).astype(jnp.bfloat16)
    n = len(params)
    for i, (w, b) in enumerate(params):
        y = jnp.dot(h, w.astype(jnp.bfloat16), preferred_element_type=jnp.float32)
        if b is not None:
            y = y + b[None, :].astype(jnp.float32)
        if i < n - 1:
            h = act(y).astype(jnp.bfloat16)
        else:
            h = y
    return h.astype(jnp.bfloat16).astype(jnp.float32)


if __name__ == "__main__":
    # Config consistent with MLPConfig defaults (hidden_layers=2, hidden=32, relu).
    batch = 2
    num_inputs = 4
    sequence_length = 8
    num_outputs = 3
    hidden_layers = 2
    hidden_size = 32
    activation = "relu"

    key = jax.random.PRNGKey(0)
    key, xkey = jax.random.split(key)
    x = jax.random.normal(xkey, (batch, sequence_length, num_inputs),
                          dtype=jnp.float32)

    params = init_mlp_params(key, num_inputs, num_outputs, sequence_length,
                             hidden_layers, hidden_size, bias=True)
    prepared = prepare_params(params)

    out = jax.block_until_ready(
        mlp_forward(x, prepared, num_outputs, activation=activation))
    ref = mlp_reference(x, params, activation=activation)
    assert out.shape == (batch, num_outputs), out.shape
    assert jnp.allclose(out, ref, atol=5e-6, rtol=1e-2), (out, ref)

    # Batch not a multiple of the tile: exercises >= 2 grid steps (megacore
    # split) and the masked partial tail block without any batch padding.
    key, xkey2 = jax.random.split(key)
    batch2 = 300
    x2 = jax.random.normal(xkey2, (batch2, sequence_length, num_inputs),
                           dtype=jnp.float32)
    out2 = jax.block_until_ready(
        mlp_forward(x2, prepared, num_outputs, activation=activation))
    ref2 = mlp_reference(x2, params, activation=activation)
    assert out2.shape == (batch2, num_outputs), out2.shape
    assert jnp.allclose(out2, ref2, atol=5e-6, rtol=1e-2)

    # Force the layer-wise (K/N-tiled) fallback used when resident weights would
    # not fit in VMEM (v7x-relevant); validated here at small shapes.
    out3 = jax.block_until_ready(
        mlp_forward(x2, prepared, num_outputs, activation=activation,
                    force_layerwise=True))
    assert out3.shape == (batch2, num_outputs), out3.shape
    assert jnp.allclose(out3, ref2, atol=5e-6, rtol=1e-2)

    # bias=False path (guards the positional ref unpacking without biases).
    params_nb = init_mlp_params(key, num_inputs, num_outputs, sequence_length,
                                hidden_layers, hidden_size, bias=False)
    prepared_nb = prepare_params(params_nb)
    out_nb = jax.block_until_ready(
        mlp_forward(x, prepared_nb, num_outputs, activation=activation))
    ref_nb = mlp_reference(x, params_nb, activation=activation)
    assert out_nb.shape == (batch, num_outputs), out_nb.shape
    assert jnp.allclose(out_nb, ref_nb, atol=5e-6, rtol=1e-2)

    print("KERNEL_OK")
</pallas_src>

<mosaic_0001>
module attributes {stable_mosaic.version = 11 : i64} {
  func.func @_mlp_fused_kernel(%arg0: i32, %arg1: memref<2x32xbf16, #tpu.memory_space<vmem>>, %arg2: memref<32x128xbf16, #tpu.memory_space<vmem>>, %arg3: memref<1x128xf32, #tpu.memory_space<vmem>>, %arg4: memref<128x128xbf16, #tpu.memory_space<vmem>>, %arg5: memref<1x128xf32, #tpu.memory_space<vmem>>, %arg6: memref<128x128xbf16, #tpu.memory_space<vmem>>, %arg7: memref<1x128xf32, #tpu.memory_space<vmem>>, %arg8: memref<2x128xbf16, #tpu.memory_space<vmem>>) attributes {dimension_semantics = [#tpu.dimension_semantics<parallel>], iteration_bounds = array<i64: 1>, scalar_prefetch = 0 : i64, scratch_operands = 0 : i64, tpu.core_type = #tpu.core_type<tc>, window_params = [{transform_indices = @transform_0, window_bounds = array<i64: 2, 32>}, {pipeline_mode = #tpu.pipeline_mode<synchronous>, transform_indices = @transform_1, window_bounds = array<i64: 32, 128>}, {pipeline_mode = #tpu.pipeline_mode<synchronous>, transform_indices = @transform_2, window_bounds = array<i64: 1, 128>}, {pipeline_mode = #tpu.pipeline_mode<synchronous>, transform_indices = @transform_3, window_bounds = array<i64: 128, 128>}, {pipeline_mode = #tpu.pipeline_mode<synchronous>, transform_indices = @transform_4, window_bounds = array<i64: 1, 128>}, {pipeline_mode = #tpu.pipeline_mode<synchronous>, transform_indices = @transform_5, window_bounds = array<i64: 128, 128>}, {pipeline_mode = #tpu.pipeline_mode<synchronous>, transform_indices = @transform_6, window_bounds = array<i64: 1, 128>}, {transform_indices = @transform_7, window_bounds = array<i64: 2, 128>}]} {
    %c0 = arith.constant 0 : index
    %c0_0 = arith.constant 0 : index
    %0 = vector.load %arg1[%c0, %c0_0] : memref<2x32xbf16, #tpu.memory_space<vmem>>, vector<2x32xbf16>
    %c0_1 = arith.constant 0 : index
    %c0_2 = arith.constant 0 : index
    %1 = vector.load %arg2[%c0_1, %c0_2] : memref<32x128xbf16, #tpu.memory_space<vmem>>, vector<32x128xbf16>
    %cst = arith.constant dense<0.000000e+00> : vector<2x128xf32>
    %2 = tpu.matmul %0, %1, %cst {dimension_numbers = #tpu.dot_dimension_numbers<[1], [0], [0], [1], [0, 0, 1, 1], [], []>} : vector<2x32xbf16>, vector<32x128xbf16>, vector<2x128xf32> -> vector<2x128xf32>
    %c0_3 = arith.constant 0 : index
    %c0_4 = arith.constant 0 : index
    %3 = vector.load %arg3[%c0_3, %c0_4] : memref<1x128xf32, #tpu.memory_space<vmem>>, vector<1x128xf32>
    %4 = vector.broadcast %3 : vector<1x128xf32> to vector<2x128xf32>
    %5 = arith.addf %2, %4 : vector<2x128xf32>
    %cst_5 = arith.constant 0.000000e+00 : f32
    %6 = vector.broadcast %cst_5 : f32 to vector<2x128xf32>
    %7 = arith.maximumf %5, %6 : vector<2x128xf32>
    %8 = arith.truncf %7 : vector<2x128xf32> to vector<2x128xbf16>
    %c0_6 = arith.constant 0 : index
    %c0_7 = arith.constant 0 : index
    %9 = vector.load %arg4[%c0_6, %c0_7] : memref<128x128xbf16, #tpu.memory_space<vmem>>, vector<128x128xbf16>
    %cst_8 = arith.constant dense<0.000000e+00> : vector<2x128xf32>
    %10 = tpu.matmul %8, %9, %cst_8 {dimension_numbers = #tpu.dot_dimension_numbers<[1], [0], [0], [1], [0, 0, 1, 1], [], []>} : vector<2x128xbf16>, vector<128x128xbf16>, vector<2x128xf32> -> vector<2x128xf32>
    %c0_9 = arith.constant 0 : index
    %c0_10 = arith.constant 0 : index
    %11 = vector.load %arg5[%c0_9, %c0_10] : memref<1x128xf32, #tpu.memory_space<vmem>>, vector<1x128xf32>
    %12 = vector.broadcast %11 : vector<1x128xf32> to vector<2x128xf32>
    %13 = arith.addf %10, %12 : vector<2x128xf32>
    %cst_11 = arith.constant 0.000000e+00 : f32
    %14 = vector.broadcast %cst_11 : f32 to vector<2x128xf32>
    %15 = arith.maximumf %13, %14 : vector<2x128xf32>
    %16 = arith.truncf %15 : vector<2x128xf32> to vector<2x128xbf16>
    %c0_12 = arith.constant 0 : index
    %c0_13 = arith.constant 0 : index
    %17 = vector.load %arg6[%c0_12, %c0_13] : memref<128x128xbf16, #tpu.memory_space<vmem>>, vector<128x128xbf16>
    %cst_14 = arith.constant dense<0.000000e+00> : vector<2x128xf32>
    %18 = tpu.matmul %16, %17, %cst_14 {dimension_numbers = #tpu.dot_dimension_numbers<[1], [0], [0], [1], [0, 0, 1, 1], [], []>} : vector<2x128xbf16>, vector<128x128xbf16>, vector<2x128xf32> -> vector<2x128xf32>
    %c0_15 = arith.constant 0 : index
    %c0_16 = arith.constant 0 : index
    %19 = vector.load %arg7[%c0_15, %c0_16] : memref<1x128xf32, #tpu.memory_space<vmem>>, vector<1x128xf32>
    %20 = vector.broadcast %19 : vector<1x128xf32> to vector<2x128xf32>
    %21 = arith.addf %18, %20 : vector<2x128xf32>
    %22 = arith.truncf %21 : vector<2x128xf32> to vector<2x128xbf16>
    %c0_17 = arith.constant 0 : index
    %c0_18 = arith.constant 0 : index
    %23 = vector.load %arg8[%c0_17, %c0_18] : memref<2x128xbf16, #tpu.memory_space<vmem>>, vector<2x128xbf16>
    tpu.vector_store %arg8[%c0_17, %c0_18], %22 {strides = array<i32>} : memref<2x128xbf16, #tpu.memory_space<vmem>>, vector<2x128xbf16>,
    return
  }
  func.func @transform_0(%arg0: i32) -> (i32, i32) {
    %c0_i32 = arith.constant 0 : i32
    %c0_i32_0 = arith.constant 0 : i32
    return %arg0, %c0_i32 : i32, i32
  }
  func.func @transform_1(%arg0: i32) -> (i32, i32) {
    %c0_i32 = arith.constant 0 : i32
    %c0_i32_0 = arith.constant 0 : i32
    %c0_i32_1 = arith.constant 0 : i32
    return %c0_i32, %c0_i32_0 : i32, i32
  }
  func.func @transform_2(%arg0: i32) -> (i32, i32) {
    %c0_i32 = arith.constant 0 : i32
    %c0_i32_0 = arith.constant 0 : i32
    %c0_i32_1 = arith.constant 0 : i32
    return %c0_i32, %c0_i32_0 : i32, i32
  }
  func.func @transform_3(%arg0: i32) -> (i32, i32) {
    %c0_i32 = arith.constant 0 : i32
    %c0_i32_0 = arith.constant 0 : i32
    %c0_i32_1 = arith.constant 0 : i32
    return %c0_i32, %c0_i32_0 : i32, i32
  }
  func.func @transform_4(%arg0: i32) -> (i32, i32) {
    %c0_i32 = arith.constant 0 : i32
    %c0_i32_0 = arith.constant 0 : i32
    %c0_i32_1 = arith.constant 0 : i32
    return %c0_i32, %c0_i32_0 : i32, i32
  }
  func.func @transform_5(%arg0: i32) -> (i32, i32) {
    %c0_i32 = arith.constant 0 : i32
    %c0_i32_0 = arith.constant 0 : i32
    %c0_i32_1 = arith.constant 0 : i32
    return %c0_i32, %c0_i32_0 : i32, i32
  }
  func.func @transform_6(%arg0: i32) -> (i32, i32) {
    %c0_i32 = arith.constant 0 : i32
    %c0_i32_0 = arith.constant 0 : i32
    %c0_i32_1 = arith.constant 0 : i32
    return %c0_i32, %c0_i32_0 : i32, i32
  }
  func.func @transform_7(%arg0: i32) -> (i32, i32) {
    %c0_i32 = arith.constant 0 : i32
    %c0_i32_0 = arith.constant 0 : i32
    return %arg0, %c0_i32 : i32, i32
  }
}

module attributes {stable_mosaic.version = 11 : i64} {
  func.func @_mlp_fused_kernel(%arg0: i32, %arg1: memref<2x32xbf16, #tpu.memory_space<vmem>>, %arg2: memref<32x128xbf16, #tpu.memory_space<vmem>>, %arg3: memref<1x128xf32, #tpu.memory_space<vmem>>, %arg4: memref<128x128xbf16, #tpu.memory_space<vmem>>, %arg5: memref<1x128xf32, #tpu.memory_space<vmem>>, %arg6: memref<128x128xbf16, #tpu.memory_space<vmem>>, %arg7: memref<1x128xf32, #tpu.memory_space<vmem>>, %arg8: memref<2x128xbf16, #tpu.memory_space<vmem>>) attributes {dimension_semantics = [#tpu.dimension_semantics<parallel>], iteration_bounds = array<i64: 1>, scalar_prefetch = 0 : i64, scratch_operands = 0 : i64, tpu.core_type = #tpu.core_type<tc>, window_params = [{transform_indices = @transform_0, window_bounds = array<i64: 2, 32>}, {pipeline_mode = #tpu.pipeline_mode<synchronous>, transform_indices = @transform_1, window_bounds = array<i64: 32, 128>}, {pipeline_mode = #tpu.pipeline_mode<synchronous>, transform_indices = @transform_2, window_bounds = array<i64: 1, 128>}, {pipeline_mode = #tpu.pipeline_mode<synchronous>, transform_indices = @transform_3, window_bounds = array<i64: 128, 128>}, {pipeline_mode = #tpu.pipeline_mode<synchronous>, transform_indices = @transform_4, window_bounds = array<i64: 1, 128>}, {pipeline_mode = #tpu.pipeline_mode<synchronous>, transform_indices = @transform_5, window_bounds = array<i64: 128, 128>}, {pipeline_mode = #tpu.pipeline_mode<synchronous>, transform_indices = @transform_6, window_bounds = array<i64: 1, 128>}, {transform_indices = @transform_7, window_bounds = array<i64: 2, 128>}]} {
    %c0 = arith.constant 0 : index
    %c0_0 = arith.constant 0 : index
    %0 = vector.load %arg1[%c0, %c0_0] : memref<2x32xbf16, #tpu.memory_space<vmem>>, vector<2x32xbf16>
    %c0_1 = arith.constant 0 : index
    %c0_2 = arith.constant 0 : index
    %1 = vector.load %arg2[%c0_1, %c0_2] : memref<32x128xbf16, #tpu.memory_space<vmem>>, vector<32x128xbf16>
    %cst = arith.constant dense<0.000000e+00> : vector<2x128xf32>
    %2 = tpu.matmul %0, %1, %cst {dimension_numbers = #tpu.dot_dimension_numbers<[1], [0], [0], [1], [0, 0, 1, 1], [], []>} : vector<2x32xbf16>, vector<32x128xbf16>, vector<2x128xf32> -> vector<2x128xf32>
    %c0_3 = arith.constant 0 : index
    %c0_4 = arith.constant 0 : index
    %3 = vector.load %arg3[%c0_3, %c0_4] : memref<1x128xf32, #tpu.memory_space<vmem>>, vector<1x128xf32>
    %4 = vector.broadcast %3 : vector<1x128xf32> to vector<2x128xf32>
    %5 = arith.addf %2, %4 : vector<2x128xf32>
    %cst_5 = arith.constant 0.000000e+00 : f32
    %6 = vector.broadcast %cst_5 : f32 to vector<2x128xf32>
    %7 = arith.maximumf %5, %6 : vector<2x128xf32>
    %8 = arith.truncf %7 : vector<2x128xf32> to vector<2x128xbf16>
    %c0_6 = arith.constant 0 : index
    %c0_7 = arith.constant 0 : index
    %9 = vector.load %arg4[%c0_6, %c0_7] : memref<128x128xbf16, #tpu.memory_space<vmem>>, vector<128x128xbf16>
    %cst_8 = arith.constant dense<0.000000e+00> : vector<2x128xf32>
    %10 = tpu.matmul %8, %9, %cst_8 {dimension_numbers = #tpu.dot_dimension_numbers<[1], [0], [0], [1], [0, 0, 1, 1], [], []>} : vector<2x128xbf16>, vector<128x128xbf16>, vector<2x128xf32> -> vector<2x128xf32>
    %c0_9 = arith.constant 0 : index
    %c0_10 = arith.constant 0 : index
    %11 = vector.load %arg5[%c0_9, %c0_10] : memref<1x128xf32, #tpu.memory_space<vmem>>, vector<1x128xf32>
    %12 = vector.broadcast %11 : vector<1x128xf32> to vector<2x128xf32>
    %13 = arith.addf %10, %12 : vector<2x128xf32>
    %cst_11 = arith.constant 0.000000e+00 : f32
    %14 = vector.broadcast %cst_11 : f32 to vector<2x128xf32>
    %15 = arith.maximumf %13, %14 : vector<2x128xf32>
    %16 = arith.truncf %15 : vector<2x128xf32> to vector<2x128xbf16>
    %c0_12 = arith.constant 0 : index
    %c0_13 = arith.constant 0 : index
    %17 = vector.load %arg6[%c0_12, %c0_13] : memref<128x128xbf16, #tpu.memory_space<vmem>>, vector<128x128xbf16>
    %cst_14 = arith.constant dense<0.000000e+00> : vector<2x128xf32>
    %18 = tpu.matmul %16, %17, %cst_14 {dimension_numbers = #tpu.dot_dimension_numbers<[1], [0], [0], [1], [0, 0, 1, 1], [], []>} : vector<2x128xbf16>, vector<128x128xbf16>, vector<2x128xf32> -> vector<2x128xf32>
    %c0_15 = arith.constant 0 : index
    %c0_16 = arith.constant 0 : index
    %19 = vector.load %arg7[%c0_15, %c0_16] : memref<1x128xf32, #tpu.memory_space<vmem>>, vector<1x128xf32>
    %20 = vector.broadcast %19 : vector<1x128xf32> to vector<2x128xf32>
    %21 = arith.addf %18, %20 : vector<2x128xf32>
    %22 = arith.truncf %21 : vector<2x128xf32> to vector<2x128xbf16>
    %c0_17 = arith.constant 0 : index
    %c0_18 = arith.constant 0 : index
    %23 = vector.load %arg8[%c0_17, %c0_18] : memref<2x128xbf16, #tpu.memory_space<vmem>>, vector<2x128xbf16>
    tpu.vector_store %arg8[%c0_17, %c0_18], %22 {strides = array<i32>} : memref<2x128xbf16, #tpu.memory_space<vmem>>, vector<2x128xbf16>,
    return
  }
  func.func @transform_0(%arg0: i32) -> (i32, i32) {
    %c0_i32 = arith.constant 0 : i32
    %c0_i32_0 = arith.constant 0 : i32
    return %arg0, %c0_i32 : i32, i32
  }
  func.func @transform_1(%arg0: i32) -> (i32, i32) {
    %c0_i32 = arith.constant 0 : i32
    %c0_i32_0 = arith.constant 0 : i32
    %c0_i32_1 = arith.constant 0 : i32
    return %c0_i32, %c0_i32_0 : i32, i32
  }
  func.func @transform_2(%arg0: i32) -> (i32, i32) {
    %c0_i32 = arith.constant 0 : i32
    %c0_i32_0 = arith.constant 0 : i32
    %c0_i32_1 = arith.constant 0 : i32
    return %c0_i32, %c0_i32_0 : i32, i32
  }
  func.func @transform_3(%arg0: i32) -> (i32, i32) {
    %c0_i32 = arith.constant 0 : i32
    %c0_i32_0 = arith.constant 0 : i32
    %c0_i32_1 = arith.constant 0 : i32
    return %c0_i32, %c0_i32_0 : i32, i32
  }
  func.func @transform_4(%arg0: i32) -> (i32, i32) {
    %c0_i32 = arith.constant 0 : i32
    %c0_i32_0 = arith.constant 0 : i32
    %c0_i32_1 = arith.constant 0 : i32
    return %c0_i32, %c0_i32_0 : i32, i32
  }
  func.func @transform_5(%arg0: i32) -> (i32, i32) {
    %c0_i32 = arith.constant 0 : i32
    %c0_i32_0 = arith.constant 0 : i32
    %c0_i32_1 = arith.constant 0 : i32
    return %c0_i32, %c0_i32_0 : i32, i32
  }
  func.func @transform_6(%arg0: i32) -> (i32, i32) {
    %c0_i32 = arith.constant 0 : i32
    %c0_i32_0 = arith.constant 0 : i32
    %c0_i32_1 = arith.constant 0 : i32
    return %c0_i32, %c0_i32_0 : i32, i32
  }
  func.func @transform_7(%arg0: i32) -> (i32, i32) {
    %c0_i32 = arith.constant 0 : i32
    %c0_i32_0 = arith.constant 0 : i32
    return %arg0, %c0_i32 : i32, i32
  }
}

</mosaic_0001>

<bundles_post_ra>
// kernel: tpu_custom_call.1
= control target key start
LH: loop header
LB: loop body
LE: loop exit
PB: predicated region body
PF: predicated region fallthrough
CT: control target
= control target key end

     0   :  { %12 = vsyncpa [#allocation3], 0  ;;  %s781_s0 = inlined_call_operand.hbm [shape: bf16[2,32], index: 0, kind: input, shape index: {}]   ;;  %s782_s1 = inlined_call_operand.hbm [shape: bf16[32,128], index: 1, kind: input, shape index: {}]   ;;  %s783_s2 = inlined_call_operand.vmem [shape: f32[1,128], index: 2, kind: input, shape index: {}]   ;;  %s784_s3 = inlined_call_operand.hbm [shape: bf16[128,128], index: 3, kind: input, shape index: {}]   ;;  %s785_s4 = inlined_call_operand.vmem [shape: f32[1,128], index: 4, kind: input, shape index: {}]   ;;  %s786_s5 = inlined_call_operand.hbm [shape: bf16[128,128], index: 5, kind: input, shape index: {}]   ;;  %s787_s6 = inlined_call_operand.vmem [shape: f32[1,128], index: 6, kind: input, shape index: {}]   ;;  %s788_s7 = inlined_call_operand.hbm [shape: bf16[2,128], index: 7, kind: output, shape index: {}]  }
   0x1   :  { %13 = vsyncpa [#allocation6], 0 }
   0x2   :  { %14 = vsyncpa [#allocation9], 0 }
   0x3   :  { %15 = vsyncpa [#allocation4], 0  ;;  %s630_s24 = smov [#allocation5]   ;;  %s512_s28 = scalar_lea.hbm %s782_s1, 256 }
   0x4   :  { %s31_s25 = sshll.u32 %s630_s24, 4  ;;  %p513_p0 = scmp.ne.s32.totalorder %s782_s1, %s512_s28  ;;  %s32_s25 = int_to_ptr.vmem [resolvable:$true] %s31_s25 }
   0x5   :  { %p516_p1 = scmp.lt.u32.totalorder %s512_s28, %s782_s1 }
   0x7   :  { %p518_p2 = pnand %p516_p1, %p513_p0 }
   0x9   :  { %521 = shalt.err (!%p518_p2)
}
   0xa   :  { %s522_s10 = scalar_lea.vmem %s32_s25, 256  ;;  %p527_p4 = scmp.lt.s32.totalorder %s32_s25, %s32_s25 }
   0xb   :  { %p523_p3 = scmp.ne.s32.totalorder %s32_s25, %s522_s10  ;;  %p528_p5 = scmp.lt.s32.totalorder %s522_s10, %s522_s10 }
   0xd   :  { %p529_p6 = por %p528_p5, %p527_p4 }
   0xf   :  { %p530_p7 = pnand %p529_p6, %p523_p3 }
  0x11   :  { %533 = shalt.err (!%p530_p7)
}
  0x12   :  { %s631_s11 = smov 64   ;;  %s632_s12 = smov 4  }
  0x13   :  { %37 = dma.hbm_to_vmem [thread:$0]  %s782_s1, 256, %s32_s25, [#allocation6], %s631_s11, %s631_s11, %s632_s12  }
  0x14   :  { %s633_s15 = smov [#allocation2]   ;;  %s634_s17 = smov [#allocation7]  }
  0x15   :  { %s22_s16 = sshll.u32 %s633_s15, 4  ;;  %s45_s18 = sshll.u32 %s634_s17, 4  ;;  %s23_s16 = int_to_ptr.vmem [resolvable:$true] %s22_s16  ;;  %s46_s18 = int_to_ptr.vmem [resolvable:$true] %s45_s18 }
  0x16   :  { %s534_s21 = scalar_lea.hbm %s781_s0, 16 }
  0x17   :  { %p535_p8 = scmp.ne.s32.totalorder %s781_s0, %s534_s21  ;;  %p538_p9 = scmp.lt.u32.totalorder %s534_s21, %s781_s0 }
  0x19   :  { %p540_p10 = pnand %p538_p9, %p535_p8 }
  0x1b   :  { %543 = shalt.err (!%p540_p10)
}
  0x1c   :  { %s544_s1 = scalar_lea.vmem %s23_s16, 16  ;;  %s548_s25 = scalar_lea.vmem %s23_s16, 32 }
  0x1d   :  { %p545_p11 = scmp.ne.s32.totalorder %s23_s16, %s544_s1  ;;  %p549_p12 = scmp.lt.s32.totalorder %s23_s16, %s23_s16 }
  0x1e   :  { %p550_p13 = scmp.lt.s32.totalorder %s548_s25, %s544_s1 }
  0x20   :  { %p551_p0 = por %p550_p13, %p549_p12 }
  0x22   :  { %p552_p1 = pnand %p551_p0, %p545_p11 }
  0x24   :  { %555 = shalt.err (!%p552_p1)
}
  0x25   :  { %25 = dma.hbm_to_vmem [thread:$0]  %s781_s0, 16, %s23_s16, [#allocation3]  }
  0x26   :  { %s556_s8 = scalar_lea.hbm %s784_s3, 1024 }
  0x27   :  { %p557_p2 = scmp.ne.s32.totalorder %s784_s3, %s556_s8  ;;  %p560_p3 = scmp.lt.u32.totalorder %s556_s8, %s784_s3 }
  0x29   :  { %p562_p4 = pnand %p560_p3, %p557_p2 }
  0x2b   :  { %565 = shalt.err (!%p562_p4)
}
  0x2c   :  { %s566_s15 = scalar_lea.vmem %s46_s18, 1024  ;;  %p571_p6 = scmp.lt.s32.totalorder %s46_s18, %s46_s18 }
  0x2d   :  { %p567_p5 = scmp.ne.s32.totalorder %s46_s18, %s566_s15  ;;  %p572_p7 = scmp.lt.s32.totalorder %s566_s15, %s566_s15 }
  0x2f   :  { %p573_p8 = por %p572_p7, %p571_p6 }
  0x31   :  { %p574_p9 = pnand %p573_p8, %p567_p5 }
  0x33   :  { %577 = shalt.err (!%p574_p9)
}
  0x34   :  { %51 = dma.hbm_to_vmem [thread:$0]  %s784_s3, 1024, %s46_s18, [#allocation6], %s631_s11, %s631_s11, %s632_s12  }
  0x35   :  { %s635_s17 = smov [#allocation8]   ;;  %s578_s22 = scalar_lea.hbm %s786_s5, 1024 }
  0x36   :  { %s59_s19 = sshll.u32 %s635_s17, 4  ;;  %p579_p10 = scmp.ne.s32.totalorder %s786_s5, %s578_s22  ;;  %s60_s19 = int_to_ptr.vmem [resolvable:$true] %s59_s19 }
  0x37   :  { %p582_p11 = scmp.lt.u32.totalorder %s578_s22, %s786_s5 }
  0x39   :  { %p584_p12 = pnand %p582_p11, %p579_p10 }
  0x3b   :  { %587 = shalt.err (!%p584_p12)
}
  0x3c   :  { %s588_s25 = scalar_lea.vmem %s60_s19, 1024  ;;  %p593_p0 = scmp.lt.s32.totalorder %s60_s19, %s60_s19 }
  0x3d   :  { %p589_p13 = scmp.ne.s32.totalorder %s60_s19, %s588_s25  ;;  %p594_p1 = scmp.lt.s32.totalorder %s588_s25, %s588_s25 }
  0x3f   :  { %p595_p2 = por %p594_p1, %p593_p0 }
  0x41   :  { %p596_p3 = pnand %p595_p2, %p589_p13 }
  0x43   :  { %599 = shalt.err (!%p596_p3)
}
  0x44   :  { %65 = dma.hbm_to_vmem [thread:$0]  %s786_s5, 1024, %s60_s19, [#allocation9], %s631_s11, %s631_s11, %s632_s12  }
  0x45   :  { %622 = dma.done.wait [#allocation3], 16  }
  0x46   :  { %623 = vsyncadd [#allocation3], 4294967280 }
  0x47   :  { %624 = dma.done.wait [#allocation6], 1280  }
  0x48   :  { %625 = vsyncadd [#allocation6], 4294966016 }
  0x49   :  { %626 = dma.done.wait [#allocation9], 1024  }
  0x4a   :  { %627 = vsyncadd [#allocation9], 4294966272  ;;  %v636_v0 = vmov 0.0   ;;  %vm637_vm0 = vmmov 0   ;;  %v494_v1 = vld [vmem:[#allocation5] sm:$0xff]   ;;  %v495_v2 = vld [vmem:[#allocation5 + $0x8] sm:$0xff]  }
  0x4b   :  { %437 = vmatprep.subr.bf16.mxu0 %v636_v0  ;;  %441 = vmatprep.mubr.msk.bf16.mxu0 %vm637_vm0, %v636_v0  ;;  %v496_v3 = vld [vmem:[#allocation7] sm:$0xff]   ;;  %vm105_vm1 = vcmask 261120   ;;  %v497_v4 = vld [vmem:[#allocation7 + $0x8] sm:$0xff]   ;;  %v498_v6 = vld [vmem:[#allocation7 + $0x10] sm:$0xff]   ;;  %s638_s29 = smov [#allocation10]  }
  0x4c   :  { %445 = vmatprep.subr.bf16.mxu1 %v636_v0  ;;  %461 = vmatprep.mubr.msk.bf16.mxu1 %vm637_vm0, %v636_v0  ;;  %v81_v5 = vld [vmem:[#allocation2] sm:$0x1]  ;;  %v499_v7 = vld [vmem:[#allocation7 + $0x18] sm:$0xff]   ;;  %v500_v8 = vld [vmem:[#allocation7 + $0x20] sm:$0xff]   ;;  %s383_s30 = sshll.u32 %s638_s29, 4  ;;  %s384_s30 = int_to_ptr.vmem [resolvable:$true] %s383_s30 }
  0x4d   :  { %438 = vmatpush3.bf16.msra.mxu0 %v494_v1  ;;  %446 = vmatpush3.bf16.msra.mxu1 %v496_v3  ;;  %v501_v9 = vld [vmem:[#allocation7 + $0x28] sm:$0xff]   ;;  %v502_v10 = vld [vmem:[#allocation7 + $0x30] sm:$0xff]   ;;  %v503_v11 = vld [vmem:[#allocation7 + $0x38] sm:$0xff]   ;;  %s604_s8 = scalar_lea.vmem %s384_s30, 32  ;;  %p605_p5 = scmp.lt.s32.totalorder %s384_s30, %s384_s30 }
  0x4e   :  { %439 = vmatprep.subr.bf16.mxu0 %v636_v0  ;;  %447 = vmatprep.subr.bf16.mxu1 %v636_v0  ;;  %v504_v12 = vld [vmem:[#allocation8] sm:$0xff]   ;;  %v505_v13 = vld [vmem:[#allocation8 + $0x8] sm:$0xff]   ;;  %v506_v14 = vld [vmem:[#allocation8 + $0x10] sm:$0xff]  }
  0x4f   :  { %v507_v15 = vld [vmem:[#allocation8 + $0x18] sm:$0xff]   ;;  %v508_v16 = vld [vmem:[#allocation8 + $0x20] sm:$0xff]   ;;  %v509_v17 = vld [vmem:[#allocation8 + $0x28] sm:$0xff]  }
  0x50   :  { %v394_v18 = vld [vmem:[%s783_s2] ss:$0 sm:$0xff]  ;;  %v510_v26 = vld [vmem:[#allocation8 + $0x30] sm:$0xff]   ;;  %v511_v27 = vld [vmem:[#allocation8 + $0x38] sm:$0xff]  }
  0x51   :  { %440 = vmatpush3.bf16.msra.mxu0 %v495_v2  ;;  %448 = vmatpush3.bf16.msra.mxu1 %v497_v4  ;;  %v398_v28 = vld [vmem:[%s785_s4] ss:$0 sm:$0xff]  ;;  %s600_s4 = scalar_lea.vmem %s384_s30, 16 }
  0x52   :  { %465 = vmatprep.subr.bf16.mxu0 %v636_v0  ;;  %449 = vmatprep.subr.bf16.mxu1 %v636_v0  ;;  %v407_v36 = vld [vmem:[%s787_s6] ss:$0 sm:$0xff]  ;;  %p601_p4 = scmp.ne.s32.totalorder %s384_s30, %s600_s4  ;;  %p606_p6 = scmp.lt.s32.totalorder %s604_s8, %s600_s4 }
  0x54   :  { %442 = vmatmul.mubr.msk.bf16.vlgmr.msra.gmra.mrb[0].mxu0 %vm105_vm1, %v81_v5  ;;  %p607_p7 = por %p606_p6, %p605_p5 }
  0x55   :  { %481 = vmatprep.mubr.msk.bf16.mxu0 %vm637_vm0, %v636_v0  ;;  %450 = vmatpush3.bf16.msra.mxu1 %v498_v6 }
  0x56   :  { %451 = vmatprep.subr.bf16.mxu1 %v636_v0  ;;  %466 = vmatpush3.bf16.msra.mxu0 %v504_v12  ;;  %p608_p8 = pnand %p607_p7, %p601_p4 }
  0x57   :  { %467 = vmatprep.subr.bf16.mxu0 %v636_v0 }
  0x59   :  { %452 = vmatpush3.bf16.msra.mxu1 %v499_v7 }
  0x5a   :  { %453 = vmatprep.subr.bf16.mxu1 %v636_v0  ;;  %468 = vmatpush3.bf16.msra.mxu0 %v505_v13 }
  0x5b   :  { %469 = vmatprep.subr.bf16.mxu0 %v636_v0 }
  0x5d   :  { %454 = vmatpush3.bf16.msra.mxu1 %v500_v8 }
  0x5e   :  { %455 = vmatprep.subr.bf16.mxu1 %v636_v0  ;;  %470 = vmatpush3.bf16.msra.mxu0 %v506_v14 }
  0x5f   :  { %471 = vmatprep.subr.bf16.mxu0 %v636_v0 }
  0x61   :  { %456 = vmatpush3.bf16.msra.mxu1 %v501_v9 }
  0x62   :  { %457 = vmatprep.subr.bf16.mxu1 %v636_v0  ;;  %472 = vmatpush3.bf16.msra.mxu0 %v507_v15 }
  0x63   :  { %473 = vmatprep.subr.bf16.mxu0 %v636_v0 }
  0x65   :  { %458 = vmatpush3.bf16.msra.mxu1 %v502_v10 }
  0x66   :  { %459 = vmatprep.subr.bf16.mxu1 %v636_v0  ;;  %474 = vmatpush3.bf16.msra.mxu0 %v508_v16 }
  0x67   :  { %475 = vmatprep.subr.bf16.mxu0 %v636_v0 }
  0x69   :  { %460 = vmatpush3.bf16.msra.mxu1 %v503_v11 }
  0x6a   :  { %476 = vmatpush3.bf16.msra.mxu0 %v509_v17 }
  0x6b   :  { %477 = vmatprep.subr.bf16.mxu0 %v636_v0 }
  0x6e   :  { %478 = vmatpush3.bf16.msra.mxu0 %v510_v26 }
  0x6f   :  { %479 = vmatprep.subr.bf16.mxu0 %v636_v0 }
  0x72   :  { %480 = vmatpush3.bf16.msra.mxu0 %v511_v27 }
 0x127   :  { %v143_v19 = vpop.f32.mrb[0].mxu0 }
 0x128   :  { %v144_v20 = vadd.f32 %v394_v18, %v143_v19  ;;  %v443_v21 = vpop.f32.mrb[1].mxu0 }
 0x129   :  { %v146_v22 = vpop.f32.mrb[2].mxu0 }
 0x12a   :  { %v149_v23 = vmax.f32 %v144_v20, 0.0  ;;  %v444_v24 = vpop.f32.mrb[3].mxu0 }
 0x12c   :  { %v150_v25 = vpack.c.bf16 %v149_v23, %v149_v23 }
 0x12e   :  { %462 = vmatmul.mubr.bf16.vlgmr.msra.gmra.mrb[0].mxu1 %v150_v25 }
 0x201   :  { %v256_v29 = vpop.f32.mrb[0].mxu1 }
 0x202   :  { %v257_v30 = vadd.f32 %v398_v28, %v256_v29  ;;  %v463_v31 = vpop.f32.mrb[1].mxu1 }
 0x203   :  { %v259_v32 = vpop.f32.mrb[2].mxu1 }
 0x204   :  { %v262_v33 = vmax.f32 %v257_v30, 0.0  ;;  %v464_v34 = vpop.f32.mrb[3].mxu1 }
 0x206   :  { %v263_v35 = vpack.c.bf16 %v262_v33, %v262_v33 }
 0x208   :  { %482 = vmatmul.mubr.bf16.vlgmr.msra.gmra.mrb[4].mxu0 %v263_v35 }
 0x2db   :  { %v369_v37 = vpop.f32.mrb[4].mxu0 }
 0x2dc   :  { %v370_v38 = vadd.f32 %v407_v36, %v369_v37  ;;  %v483_v39 = vpop.f32.mrb[5].mxu0 }
 0x2dd   :  { %v372_v40 = vpop.f32.mrb[6].mxu0 }
 0x2de   :  { %v375_v41 = vpack.c.bf16 %v370_v38, %v370_v38  ;;  %v484_v42 = vpop.f32.mrb[7].mxu0 }
 0x2e0   :  { %376 = vst [vmem:[#allocation10] sm:$0x1] %v375_v41 }
 0x2e1   :  { %611 = shalt.err (!%p608_p8)
}
 0x2e2   :  { %s612_s10 = scalar_lea.hbm %s788_s7, 16 }
 0x2e3   :  { %p613_p9 = scmp.ne.s32.totalorder %s788_s7, %s612_s10  ;;  %p616_p10 = scmp.lt.u32.totalorder %s612_s10, %s788_s7 }
 0x2e5   :  { %p618_p11 = pnand %p616_p10, %p613_p9 }
 0x2e7   :  { %621 = shalt.err (!%p618_p11)
}
 0x2e8   :  { %386 = dma.vmem_to_hbm [thread:$0]  %s384_s30, 16, %s788_s7, [#allocation4]  }
 0x2e9   :  { %628 = dma.done.wait [#allocation4], 16  }
 0x2ea   :  { %629 = vsyncadd [#allocation4], 4294967280 }
 0x2eb   :  { %390 = vsyncpa [#allocation3], 1 }
 0x2ec   :  { %391 = vsyncpa [#allocation6], 1 }
 0x2ed   :  { %392 = vsyncpa [#allocation9], 1 }
 0x2ee   :  { %393 = vsyncpa [#allocation4], 1 }

// kernel: tpu_custom_call.1
= control target key start
LH: loop header
LB: loop body
LE: loop exit
PB: predicated region body
PF: predicated region fallthrough
CT: control target
= control target key end

     0   :  { %12 = vsyncpa [#allocation3], 0  ;;  %s781_s0 = inlined_call_operand.hbm [shape: bf16[2,32], index: 0, kind: input, shape index: {}]   ;;  %s782_s1 = inlined_call_operand.hbm [shape: bf16[32,128], index: 1, kind: input, shape index: {}]   ;;  %s783_s2 = inlined_call_operand.vmem [shape: f32[1,128], index: 2, kind: input, shape index: {}]   ;;  %s784_s3 = inlined_call_operand.hbm [shape: bf16[128,128], index: 3, kind: input, shape index: {}]   ;;  %s785_s4 = inlined_call_operand.vmem [shape: f32[1,128], index: 4, kind: input, shape index: {}]   ;;  %s786_s5 = inlined_call_operand.hbm [shape: bf16[128,128], index: 5, kind: input, shape index: {}]   ;;  %s787_s6 = inlined_call_operand.vmem [shape: f32[1,128], index: 6, kind: input, shape index: {}]   ;;  %s788_s7 = inlined_call_operand.hbm [shape: bf16[2,128], index: 7, kind: output, shape index: {}]  }
   0x1   :  { %13 = vsyncpa [#allocation6], 0 }
   0x2   :  { %14 = vsyncpa [#allocation9], 0 }
   0x3   :  { %15 = vsyncpa [#allocation4], 0  ;;  %s630_s24 = smov [#allocation5]   ;;  %s512_s28 = scalar_lea.hbm %s782_s1, 256 }
   0x4   :  { %s31_s25 = sshll.u32 %s630_s24, 4  ;;  %p513_p0 = scmp.ne.s32.totalorder %s782_s1, %s512_s28  ;;  %s32_s25 = int_to_ptr.vmem [resolvable:$true] %s31_s25 }
   0x5   :  { %p516_p1 = scmp.lt.u32.totalorder %s512_s28, %s782_s1 }
   0x7   :  { %p518_p2 = pnand %p516_p1, %p513_p0 }
   0x9   :  { %521 = shalt.err (!%p518_p2)
}
   0xa   :  { %s522_s10 = scalar_lea.vmem %s32_s25, 256  ;;  %p527_p4 = scmp.lt.s32.totalorder %s32_s25, %s32_s25 }
   0xb   :  { %p523_p3 = scmp.ne.s32.totalorder %s32_s25, %s522_s10  ;;  %p528_p5 = scmp.lt.s32.totalorder %s522_s10, %s522_s10 }
   0xd   :  { %p529_p6 = por %p528_p5, %p527_p4 }
   0xf   :  { %p530_p7 = pnand %p529_p6, %p523_p3 }
  0x11   :  { %533 = shalt.err (!%p530_p7)
}
  0x12   :  { %s631_s11 = smov 64   ;;  %s632_s12 = smov 4  }
  0x13   :  { %37 = dma.hbm_to_vmem [thread:$0]  %s782_s1, 256, %s32_s25, [#allocation6], %s631_s11, %s631_s11, %s632_s12  }
  0x14   :  { %s633_s15 = smov [#allocation2]   ;;  %s634_s17 = smov [#allocation7]  }
  0x15   :  { %s22_s16 = sshll.u32 %s633_s15, 4  ;;  %s45_s18 = sshll.u32 %s634_s17, 4  ;;  %s23_s16 = int_to_ptr.vmem [resolvable:$true] %s22_s16  ;;  %s46_s18 = int_to_ptr.vmem [resolvable:$true] %s45_s18 }
  0x16   :  { %s534_s21 = scalar_lea.hbm %s781_s0, 16 }
  0x17   :  { %p535_p8 = scmp.ne.s32.totalorder %s781_s0, %s534_s21  ;;  %p538_p9 = scmp.lt.u32.totalorder %s534_s21, %s781_s0 }
  0x19   :  { %p540_p10 = pnand %p538_p9, %p535_p8 }
  0x1b   :  { %543 = shalt.err (!%p540_p10)
}
  0x1c   :  { %s544_s1 = scalar_lea.vmem %s23_s16, 16  ;;  %s548_s25 = scalar_lea.vmem %s23_s16, 32 }
  0x1d   :  { %p545_p11 = scmp.ne.s32.totalorder %s23_s16, %s544_s1  ;;  %p549_p12 = scmp.lt.s32.totalorder %s23_s16, %s23_s16 }
  0x1e   :  { %p550_p13 = scmp.lt.s32.totalorder %s548_s25, %s544_s1 }
  0x20   :  { %p551_p0 = por %p550_p13, %p549_p12 }
  0x22   :  { %p552_p1 = pnand %p551_p0, %p545_p11 }
  0x24   :  { %555 = shalt.err (!%p552_p1)
}
  0x25   :  { %25 = dma.hbm_to_vmem [thread:$0]  %s781_s0, 16, %s23_s16, [#allocation3]  }
  0x26   :  { %s556_s8 = scalar_lea.hbm %s784_s3, 1024 }
  0x27   :  { %p557_p2 = scmp.ne.s32.totalorder %s784_s3, %s556_s8  ;;  %p560_p3 = scmp.lt.u32.totalorder %s556_s8, %s784_s3 }
  0x29   :  { %p562_p4 = pnand %p560_p3, %p557_p2 }
  0x2b   :  { %565 = shalt.err (!%p562_p4)
}
  0x2c   :  { %s566_s15 = scalar_lea.vmem %s46_s18, 1024  ;;  %p571_p6 = scmp.lt.s32.totalorder %s46_s18, %s46_s18 }
  0x2d   :  { %p567_p5 = scmp.ne.s32.totalorder %s46_s18, %s566_s15  ;;  %p572_p7 = scmp.lt.s32.totalorder %s566_s15, %s566_s15 }
  0x2f   :  { %p573_p8 = por %p572_p7, %p571_p6 }
  0x31   :  { %p574_p9 = pnand %p573_p8, %p567_p5 }
  0x33   :  { %577 = shalt.err (!%p574_p9)
}
  0x34   :  { %51 = dma.hbm_to_vmem [thread:$0]  %s784_s3, 1024, %s46_s18, [#allocation6], %s631_s11, %s631_s11, %s632_s12  }
  0x35   :  { %s635_s17 = smov [#allocation8]   ;;  %s578_s22 = scalar_lea.hbm %s786_s5, 1024 }
  0x36   :  { %s59_s19 = sshll.u32 %s635_s17, 4  ;;  %p579_p10 = scmp.ne.s32.totalorder %s786_s5, %s578_s22  ;;  %s60_s19 = int_to_ptr.vmem [resolvable:$true] %s59_s19 }
  0x37   :  { %p582_p11 = scmp.lt.u32.totalorder %s578_s22, %s786_s5 }
  0x39   :  { %p584_p12 = pnand %p582_p11, %p579_p10 }
  0x3b   :  { %587 = shalt.err (!%p584_p12)
}
  0x3c   :  { %s588_s25 = scalar_lea.vmem %s60_s19, 1024  ;;  %p593_p0 = scmp.lt.s32.totalorder %s60_s19, %s60_s19 }
  0x3d   :  { %p589_p13 = scmp.ne.s32.totalorder %s60_s19, %s588_s25  ;;  %p594_p1 = scmp.lt.s32.totalorder %s588_s25, %s588_s25 }
  0x3f   :  { %p595_p2 = por %p594_p1, %p593_p0 }
  0x41   :  { %p596_p3 = pnand %p595_p2, %p589_p13 }
  0x43   :  { %599 = shalt.err (!%p596_p3)
}
  0x44   :  { %65 = dma.hbm_to_vmem [thread:$0]  %s786_s5, 1024, %s60_s19, [#allocation9], %s631_s11, %s631_s11, %s632_s12  }
  0x45   :  { %622 = dma.done.wait [#allocation3], 16  }
  0x46   :  { %623 = vsyncadd [#allocation3], 4294967280 }
  0x47   :  { %624 = dma.done.wait [#allocation6], 1280  }
  0x48   :  { %625 = vsyncadd [#allocation6], 4294966016 }
  0x49   :  { %626 = dma.done.wait [#allocation9], 1024  }
  0x4a   :  { %627 = vsyncadd [#allocation9], 4294966272  ;;  %v636_v0 = vmov 0.0   ;;  %vm637_vm0 = vmmov 0   ;;  %v494_v1 = vld [vmem:[#allocation5] sm:$0xff]   ;;  %v495_v2 = vld [vmem:[#allocation5 + $0x8] sm:$0xff]  }
  0x4b   :  { %437 = vmatprep.subr.bf16.mxu0 %v636_v0  ;;  %441 = vmatprep.mubr.msk.bf16.mxu0 %vm637_vm0, %v636_v0  ;;  %v496_v3 = vld [vmem:[#allocation7] sm:$0xff]   ;;  %vm105_vm1 = vcmask 261120   ;;  %v497_v4 = vld [vmem:[#allocation7 + $0x8] sm:$0xff]   ;;  %v498_v6 = vld [vmem:[#allocation7 + $0x10] sm:$0xff]   ;;  %s638_s29 = smov [#allocation10]  }
  0x4c   :  { %445 = vmatprep.subr.bf16.mxu1 %v636_v0  ;;  %461 = vmatprep.mubr.msk.bf16.mxu1 %vm637_vm0, %v636_v0  ;;  %v81_v5 = vld [vmem:[#allocation2] sm:$0x1]  ;;  %v499_v7 = vld [vmem:[#allocation7 + $0x18] sm:$0xff]   ;;  %v500_v8 = vld [vmem:[#allocation7 + $0x20] sm:$0xff]   ;;  %s383_s30 = sshll.u32 %s638_s29, 4  ;;  %s384_s30 = int_to_ptr.vmem [resolvable:$true] %s383_s30 }
  0x4d   :  { %438 = vmatpush3.bf16.msra.mxu0 %v494_v1  ;;  %446 = vmatpush3.bf16.msra.mxu1 %v496_v3  ;;  %v501_v9 = vld [vmem:[#allocation7 + $0x28] sm:$0xff]   ;;  %v502_v10 = vld [vmem:[#allocation7 + $0x30] sm:$0xff]   ;;  %v503_v11 = vld [vmem:[#allocation7 + $0x38] sm:$0xff]   ;;  %s604_s8 = scalar_lea.vmem %s384_s30, 32  ;;  %p605_p5 = scmp.lt.s32.totalorder %s384_s30, %s384_s30 }
  0x4e   :  { %439 = vmatprep.subr.bf16.mxu0 %v636_v0  ;;  %447 = vmatprep.subr.bf16.mxu1 %v636_v0  ;;  %v504_v12 = vld [vmem:[#allocation8] sm:$0xff]   ;;  %v505_v13 = vld [vmem:[#allocation8 + $0x8] sm:$0xff]   ;;  %v506_v14 = vld [vmem:[#allocation8 + $0x10] sm:$0xff]  }
  0x4f   :  { %v507_v15 = vld [vmem:[#allocation8 + $0x18] sm:$0xff]   ;;  %v508_v16 = vld [vmem:[#allocation8 + $0x20] sm:$0xff]   ;;  %v509_v17 = vld [vmem:[#allocation8 + $0x28] sm:$0xff]  }
  0x50   :  { %v394_v18 = vld [vmem:[%s783_s2] ss:$0 sm:$0xff]  ;;  %v510_v26 = vld [vmem:[#allocation8 + $0x30] sm:$0xff]   ;;  %v511_v27 = vld [vmem:[#allocation8 + $0x38] sm:$0xff]  }
  0x51   :  { %440 = vmatpush3.bf16.msra.mxu0 %v495_v2  ;;  %448 = vmatpush3.bf16.msra.mxu1 %v497_v4  ;;  %v398_v28 = vld [vmem:[%s785_s4] ss:$0 sm:$0xff]  ;;  %s600_s4 = scalar_lea.vmem %s384_s30, 16 }
  0x52   :  { %465 = vmatprep.subr.bf16.mxu0 %v636_v0  ;;  %449 = vmatprep.subr.bf16.mxu1 %v636_v0  ;;  %v407_v36 = vld [vmem:[%s787_s6] ss:$0 sm:$0xff]  ;;  %p601_p4 = scmp.ne.s32.totalorder %s384_s30, %s600_s4  ;;  %p606_p6 = scmp.lt.s32.totalorder %s604_s8, %s600_s4 }
  0x54   :  { %442 = vmatmul.mubr.msk.bf16.vlgmr.msra.gmra.mrb[0].mxu0 %vm105_vm1, %v81_v5  ;;  %p607_p7 = por %p606_p6, %p605_p5 }
  0x55   :  { %481 = vmatprep.mubr.msk.bf16.mxu0 %vm637_vm0, %v636_v0  ;;  %450 = vmatpush3.bf16.msra.mxu1 %v498_v6 }
  0x56   :  { %451 = vmatprep.subr.bf16.mxu1 %v636_v0  ;;  %466 = vmatpush3.bf16.msra.mxu0 %v504_v12  ;;  %p608_p8 = pnand %p607_p7, %p601_p4 }
  0x57   :  { %467 = vmatprep.subr.bf16.mxu0 %v636_v0 }
  0x59   :  { %452 = vmatpush3.bf16.msra.mxu1 %v499_v7 }
  0x5a   :  { %453 = vmatprep.subr.bf16.mxu1 %v636_v0  ;;  %468 = vmatpush3.bf16.msra.mxu0 %v505_v13 }
  0x5b   :  { %469 = vmatprep.subr.bf16.mxu0 %v636_v0 }
  0x5d   :  { %454 = vmatpush3.bf16.msra.mxu1 %v500_v8 }
  0x5e   :  { %455 = vmatprep.subr.bf16.mxu1 %v636_v0  ;;  %470 = vmatpush3.bf16.msra.mxu0 %v506_v14 }
  0x5f   :  { %471 = vmatprep.subr.bf16.mxu0 %v636_v0 }
  0x61   :  { %456 = vmatpush3.bf16.msra.mxu1 %v501_v9 }
  0x62   :  { %457 = vmatprep.subr.bf16.mxu1 %v636_v0  ;;  %472 = vmatpush3.bf16.msra.mxu0 %v507_v15 }
  0x63   :  { %473 = vmatprep.subr.bf16.mxu0 %v636_v0 }
  0x65   :  { %458 = vmatpush3.bf16.msra.mxu1 %v502_v10 }
  0x66   :  { %459 = vmatprep.subr.bf16.mxu1 %v636_v0  ;;  %474 = vmatpush3.bf16.msra.mxu0 %v508_v16 }
  0x67   :  { %475 = vmatprep.subr.bf16.mxu0 %v636_v0 }
  0x69   :  { %460 = vmatpush3.bf16.msra.mxu1 %v503_v11 }
  0x6a   :  { %476 = vmatpush3.bf16.msra.mxu0 %v509_v17 }
  0x6b   :  { %477 = vmatprep.subr.bf16.mxu0 %v636_v0 }
  0x6e   :  { %478 = vmatpush3.bf16.msra.mxu0 %v510_v26 }
  0x6f   :  { %479 = vmatprep.subr.bf16.mxu0 %v636_v0 }
  0x72   :  { %480 = vmatpush3.bf16.msra.mxu0 %v511_v27 }
 0x127   :  { %v143_v19 = vpop.f32.mrb[0].mxu0 }
 0x128   :  { %v144_v20 = vadd.f32 %v394_v18, %v143_v19  ;;  %v443_v21 = vpop.f32.mrb[1].mxu0 }
 0x129   :  { %v146_v22 = vpop.f32.mrb[2].mxu0 }
 0x12a   :  { %v149_v23 = vmax.f32 %v144_v20, 0.0  ;;  %v444_v24 = vpop.f32.mrb[3].mxu0 }
 0x12c   :  { %v150_v25 = vpack.c.bf16 %v149_v23, %v149_v23 }
 0x12e   :  { %462 = vmatmul.mubr.bf16.vlgmr.msra.gmra.mrb[0].mxu1 %v150_v25 }
 0x201   :  { %v256_v29 = vpop.f32.mrb[0].mxu1 }
 0x202   :  { %v257_v30 = vadd.f32 %v398_v28, %v256_v29  ;;  %v463_v31 = vpop.f32.mrb[1].mxu1 }
 0x203   :  { %v259_v32 = vpop.f32.mrb[2].mxu1 }
 0x204   :  { %v262_v33 = vmax.f32 %v257_v30, 0.0  ;;  %v464_v34 = vpop.f32.mrb[3].mxu1 }
 0x206   :  { %v263_v35 = vpack.c.bf16 %v262_v33, %v262_v33 }
 0x208   :  { %482 = vmatmul.mubr.bf16.vlgmr.msra.gmra.mrb[4].mxu0 %v263_v35 }
 0x2db   :  { %v369_v37 = vpop.f32.mrb[4].mxu0 }
 0x2dc   :  { %v370_v38 = vadd.f32 %v407_v36, %v369_v37  ;;  %v483_v39 = vpop.f32.mrb[5].mxu0 }
 0x2dd   :  { %v372_v40 = vpop.f32.mrb[6].mxu0 }
 0x2de   :  { %v375_v41 = vpack.c.bf16 %v370_v38, %v370_v38  ;;  %v484_v42 = vpop.f32.mrb[7].mxu0 }
 0x2e0   :  { %376 = vst [vmem:[#allocation10] sm:$0x1] %v375_v41 }
 0x2e1   :  { %611 = shalt.err (!%p608_p8)
}
 0x2e2   :  { %s612_s10 = scalar_lea.hbm %s788_s7, 16 }
 0x2e3   :  { %p613_p9 = scmp.ne.s32.totalorder %s788_s7, %s612_s10  ;;  %p616_p10 = scmp.lt.u32.totalorder %s612_s10, %s788_s7 }
 0x2e5   :  { %p618_p11 = pnand %p616_p10, %p613_p9 }
 0x2e7   :  { %621 = shalt.err (!%p618_p11)
}
 0x2e8   :  { %386 = dma.vmem_to_hbm [thread:$0]  %s384_s30, 16, %s788_s7, [#allocation4]  }
 0x2e9   :  { %628 = dma.done.wait [#allocation4], 16  }
 0x2ea   :  { %629 = vsyncadd [#allocation4], 4294967280 }
 0x2eb   :  { %390 = vsyncpa [#allocation3], 1 }
 0x2ec   :  { %391 = vsyncpa [#allocation6], 1 }
 0x2ed   :  { %392 = vsyncpa [#allocation9], 1 }
 0x2ee   :  { %393 = vsyncpa [#allocation4], 1 }

</bundles_post_ra>
